<compile_context>
chip_gen: v5e
topology: v5e:2x2
jax: 0.10.0
libtpu: 0.0.40
codegen_flags: <defaults>
</compile_context>

<pallas_src>
import jax
import jax.numpy as jnp
from jax.experimental import pallas as pl
from jax.experimental.pallas import tpu as pltpu


def _round_up(x, m):
    return ((x + m - 1) // m) * m


# ----------------------------- Pallas kernel --------------------------------
def _valuenet_kernel(
    feat_ref,    # (TM, 2*L*E + E + Du)   [ub | q*ub | q | u], compute dtype
    wbig_ref,    # (2*L*E + E + Du, L*H1) block-diagonal attention fc1 weight
    attb_ref,    # (1, L*H1)              attention fc1 bias tiled over L (f32)
    pools_ref,   # (L*H1, L*E)            kron(I_L, (w2@w3) · 1_E), compute dtype
    fw1qu_ref,   # (E+Du, F1)             head fc1 rows for [q | u]
    fw1bt_ref,   # (L*E, F1)              tile(head fc1 browse rows, (L, 1))
    fw2_ref,     # (F1, F2)
    head_ref,    # (5, max(F1,F2)) f32    rows: fc_b1 | fc_b2 | fc_w3^T | b23 | fc_b3
    o_ref,       # (TM, 1) f32
):
    feat = feat_ref[...]
    LE = pools_ref.shape[1]            # L * E
    EDu = fw1qu_ref.shape[0]           # E + Du
    F1 = fw1qu_ref.shape[1]
    F2 = fw2_ref.shape[1]
    head = head_ref[...]

    # --- LocalActivationUnit fc1 for every history slot in ONE matmul ---------
    pre = jnp.dot(feat, wbig_ref[...], preferred_element_type=jnp.float32)
    h1 = jnp.maximum(pre + attb_ref[...], 0.0)                        # (TM, L*H1) f32

    # --- att fc2·fc3 fold + per-slot reduce + broadcast over E, via one matmul -
    b23 = head[3:4, 0:1]
    score_exp = jnp.dot(h1.astype(feat.dtype), pools_ref[...],
                        preferred_element_type=jnp.float32) + b23      # (TM, L*E) f32

    # Weighted history kept lane-dense.  Masked / padded slots have ub == 0, so
    # they contribute exactly 0 (same as the reference's masked_fill of the score).
    wub = score_exp * feat[:, :LE].astype(jnp.float32)                 # (TM, L*E) f32

    # --- head fc1: [q | u] part + folded browse part ---------------------------
    qu = feat[:, 2 * LE:2 * LE + EDu]                                   # (TM, E+Du)
    f1 = jnp.maximum(
        jnp.dot(qu, fw1qu_ref[...], preferred_element_type=jnp.float32)
        + jnp.dot(wub.astype(feat.dtype), fw1bt_ref[...],
                  preferred_element_type=jnp.float32)
        + head[0:1, :F1], 0.0)                                          # (TM, F1) f32
    # TODO(synk): nn.Dropout layers are inference-mode identity here (eval forward).
    f2 = jnp.maximum(
        jnp.dot(f1.astype(feat.dtype), fw2_ref[...],
                preferred_element_type=jnp.float32) + head[1:2, :F2], 0.0)
    # Final F2 -> 1 projection on the VPU (a 1-column MXU matmul would waste it).
    out = jnp.sum(f2 * head[2:3, :F2], axis=-1, keepdims=True) + head[4:5, 0:1]
    o_ref[...] = out                                                    # (TM, 1)


# --------------------- one-time host-side weight prep -------------------------
def prepare_valuenet_weights(params, seq_len, compute_dtype=jnp.bfloat16):
    """Splits / folds / casts the module weights once; reuse across forwards."""
    L = seq_len
    E = params["item_tbl"].shape[1] + params["cate_tbl"].shape[1]
    Du = params["user_tbl"].shape[1]
    cd = compute_dtype

    w1 = params["att_w1"]                        # (4E, H1)
    H1 = w1.shape[1]
    w1_q = w1[0:E] + w1[2 * E:3 * E]             # query part of [q|ub|q-ub|q*ub]
    w1_ub = w1[E:2 * E] - w1[2 * E:3 * E]        # history part
    w1_qub = w1[3 * E:4 * E]                     # q*history part
    eye_l = jnp.eye(L, dtype=w1.dtype)
    wbig = jnp.concatenate([
        jnp.kron(eye_l, w1_ub),                  # (L*E, L*H1)  block-diag
        jnp.kron(eye_l, w1_qub),                 # (L*E, L*H1)  block-diag
        jnp.tile(w1_q, (1, L)),                  # (E,   L*H1)  shared query slab
        jnp.zeros((Du, L * H1), w1.dtype),       # (Du,  L*H1)  user lanes unused
    ], axis=0).astype(cd)

    attb = jnp.tile(params["att_b1"], (1, L)).astype(jnp.float32)      # (1, L*H1)
    w23 = params["att_w2"] @ params["att_w3"]                          # (H1, 1)
    b23 = params["att_b2"] @ params["att_w3"] + params["att_b3"]       # (1, 1)
    pools = jnp.kron(eye_l, jnp.tile(w23, (1, E))).astype(cd)          # (L*H1, L*E)

    fw1 = params["fc_w1"]                        # (2E+Du, F1)
    F1 = fw1.shape[1]
    fw1qu = jnp.concatenate([fw1[0:E], fw1[2 * E:]], axis=0).astype(cd)   # (E+Du, F1)
    fw1bt = jnp.tile(fw1[E:2 * E], (L, 1)).astype(cd)                     # (L*E, F1)
    fw2 = params["fc_w2"].astype(cd)
    F2 = fw2.shape[1]

    fm = max(F1, F2, 1)

    def _row(v):
        v = v.reshape(1, -1).astype(jnp.float32)
        return jnp.pad(v, ((0, 0), (0, fm - v.shape[1])))

    head_pack = jnp.concatenate(
        [_row(params["fc_b1"]), _row(params["fc_b2"]), _row(params["fc_w3"].T),
         _row(b23), _row(params["fc_b3"])], axis=0)                    # (5, fm) f32

    return dict(wbig=wbig, attb=attb, pools=pools, fw1qu=fw1qu,
                fw1bt=fw1bt, fw2=fw2, head_pack=head_pack)


# ------------------------------ wrapper ----------------------------------------
def _rep_spec(arr):
    nd = arr.ndim
    return pl.BlockSpec(arr.shape, lambda i, _nd=nd: (0,) * _nd)


def valuenet_user_forward(params, user, items, items_cate, interest_items,
                          interest_items_cate, *, tm=512,
                          compute_dtype=jnp.bfloat16, prepared=None):
    item_tbl = params["item_tbl"]
    cate_tbl = params["cate_tbl"]
    user_tbl = params["user_tbl"]

    B, N = items.shape
    L = interest_items.shape[-1]
    E = item_tbl.shape[1] + cate_tbl.shape[1]
    M = B * N

    if prepared is None:  # prefer hoisting this out and caching it across calls
        prepared = prepare_valuenet_weights(params, L, compute_dtype)

    # Row tile: multiple of 16 (bf16 sublane packing), never larger than the padded
    # batch, capped so the grid has >= 2 steps when possible (both v7x TensorCores).
    SUB = 16
    m_r = _round_up(M, SUB)
    cap = max(SUB, _round_up((m_r + 1) // 2, SUB))
    tm_eff = min(max(SUB, _round_up(tm, SUB)), m_r, cap)
    Mp = _round_up(M, tm_eff)
    pad = Mp - M

    # ---- flatten + pad the *index* tensors (cheap int ops) so the gathered float
    #      tensors come out already padded; no extra HBM pad pass. -----------------
    items_f = items.reshape(M)
    cates_f = items_cate.reshape(M)
    user_f = user.reshape(M)
    hist_f = interest_items.reshape(M, L)
    hist_cate_f = interest_items_cate.reshape(M, L)
    if pad:
        items_f = jnp.pad(items_f, (0, pad))
        cates_f = jnp.pad(cates_f, (0, pad))
        user_f = jnp.pad(user_f, (0, pad))
        hist_f = jnp.pad(hist_f, ((0, pad), (0, 0)))
        hist_cate_f = jnp.pad(hist_cate_f, ((0, pad), (0, 0)))

    q = jnp.concatenate([item_tbl[items_f], cate_tbl[cates_f]], axis=-1)     # (Mp, E)
    u = user_tbl[user_f]                                                     # (Mp, Du)
    ub = jnp.concatenate([item_tbl[hist_f], cate_tbl[hist_cate_f]], axis=-1)
    # Exact masked_fill equivalence: zero the history embedding wherever the history
    # item id is 0, so score * ub is exactly 0 there (no reliance on the embedding
    # tables having a zero padding row).
    ub = jnp.where((hist_f == 0)[..., None], 0.0, ub)                        # (Mp,L,E)
    qub = q[:, None, :] * ub                                                 # (Mp,L,E)

    cd = compute_dtype
    feat = jnp.concatenate(
        [ub.reshape(Mp, L * E), qub.reshape(Mp, L * E), q, u],
        axis=-1).astype(cd)                                                  # (Mp, 288)
    W = feat.shape[1]

    weights = [prepared["wbig"], prepared["attb"], prepared["pools"],
               prepared["fw1qu"], prepared["fw1bt"], prepared["fw2"],
               prepared["head_pack"]]

    grid = (Mp // tm_eff,)
    in_specs = [pl.BlockSpec((tm_eff, W), lambda i: (i, 0))] + \
               [_rep_spec(w) for w in weights]

    out = pl.pallas_call(
        _valuenet_kernel,
        out_shape=jax.ShapeDtypeStruct((Mp, 1), jnp.float32),
        grid_spec=pltpu.PrefetchScalarGridSpec(
            num_scalar_prefetch=0,
            grid=grid,
            in_specs=in_specs,
            out_specs=pl.BlockSpec((tm_eff, 1), lambda i: (i, 0)),
        ),
        compiler_params=pltpu.CompilerParams(
            dimension_semantics=("parallel",),
            vmem_limit_bytes=32 * 1024 * 1024),
    )(feat, *weights)

    mid_res = out[:M, 0].reshape(B, N)                # squeeze(-1)
    return jnp.mean(mid_res, axis=1, keepdims=True)   # mean over dim 1, unsqueeze(-1)


# --------------------------- pure-JAX reference ---------------------------------
def valuenet_user_reference(params, user, items, items_cate, interest_items,
                            interest_items_cate):
    user_emb = params["user_tbl"][user]
    item_emb = jnp.concatenate(
        [params["item_tbl"][items], params["cate_tbl"][items_cate]], axis=-1)
    rec_his = jnp.concatenate(
        [params["item_tbl"][interest_items], params["cate_tbl"][interest_items_cate]],
        axis=-1)

    qe = jnp.broadcast_to(item_emb[:, :, None, :], rec_his.shape)      # (B,N,L,E)
    ain = jnp.concatenate([qe, rec_his, qe - rec_his, qe * rec_his], axis=-1)
    h1 = jnp.maximum(ain @ params["att_w1"] + params["att_b1"], 0.0)
    h2 = h1 @ params["att_w2"] + params["att_b2"]
    score = h2 @ params["att_w3"] + params["att_b3"]                   # (B,N,L,1)
    score = jnp.swapaxes(score, 2, 3)                                  # (B,N,1,L)
    mask = (interest_items == 0)[:, :, None, :]
    score = jnp.where(mask, 0.0, score)
    browse = jnp.matmul(score, rec_his)[:, :, 0, :]                    # (B,N,E)
    feat = jnp.concatenate([item_emb, browse, user_emb], axis=-1)
    f1 = jnp.maximum(feat @ params["fc_w1"] + params["fc_b1"], 0.0)
    f2 = jnp.maximum(f1 @ params["fc_w2"] + params["fc_b2"], 0.0)
    mid = (f2 @ params["fc_w3"] + params["fc_b3"])[..., 0]
    return jnp.mean(mid, axis=1, keepdims=True)


# ------------------------------- setup ------------------------------------------
def _xavier(key, shape):
    fan_in, fan_out = shape[0], shape[-1]
    bound = (6.0 / (fan_in + fan_out)) ** 0.5
    return jax.random.uniform(key, shape, jnp.float32, -bound, bound)


def make_params(key, *, n_users, max_item_num, n_cates, user_id_dim, item_id_dim,
                item_cate_id_dim, hid_units):
    E = item_id_dim + item_cate_id_dim
    Dtot = user_id_dim + 2 * E
    assert hid_units[-1] == 1
    ks = jax.random.split(key, 16)
    p = {}
    p["user_tbl"] = _xavier(ks[0], (n_users, user_id_dim)).at[0].set(0.0)
    p["item_tbl"] = _xavier(ks[1], (max_item_num, item_id_dim)).at[0].set(0.0)
    p["cate_tbl"] = _xavier(ks[2], (n_cates + 1, item_cate_id_dim)).at[0].set(0.0)
    # LocalActivationUnit (hidden_unit fixed to [64, 16] in AttentionSequencePoolingLayer)
    p["att_w1"] = _xavier(ks[3], (4 * E, 64)); p["att_b1"] = _xavier(ks[4], (1, 64))
    p["att_w2"] = _xavier(ks[5], (64, 16));    p["att_b2"] = _xavier(ks[6], (1, 16))
    p["att_w3"] = _xavier(ks[7], (16, 1));     p["att_b3"] = _xavier(ks[8], (1, 1))
    # FC head: hid_units = [64, 16, 1]
    p["fc_w1"] = _xavier(ks[9], (Dtot, hid_units[0]));          p["fc_b1"] = _xavier(ks[10], (1, hid_units[0]))
    p["fc_w2"] = _xavier(ks[11], (hid_units[0], hid_units[1])); p["fc_b2"] = _xavier(ks[12], (1, hid_units[1]))
    p["fc_w3"] = _xavier(ks[13], (hid_units[1], hid_units[2])); p["fc_b3"] = _xavier(ks[14], (1, hid_units[2]))
    return p


if __name__ == "__main__":
    # config (mirrors ValueNet_user.__init__ fields)
    B, N, L = 2, 4, 8
    user_id_dim, item_id_dim, item_cate_id_dim = 16, 8, 8
    n_users, max_item_num, n_cates = 5, 32, 6
    hid_units = [64, 16, 1]

    key = jax.random.PRNGKey(0)
    kp, k1, k2, k3, k4, k5 = jax.random.split(key, 6)
    params = make_params(
        kp, n_users=n_users, max_item_num=max_item_num, n_cates=n_cates,
        user_id_dim=user_id_dim, item_id_dim=item_id_dim,
        item_cate_id_dim=item_cate_id_dim, hid_units=hid_units)

    user = jax.random.randint(k1, (B, N), 1, n_users, dtype=jnp.int32)
    items = jax.random.randint(k2, (B, N), 1, max_item_num, dtype=jnp.int32)
    items_cate = jax.random.randint(k3, (B, N), 1, n_cates + 1, dtype=jnp.int32)
    interest_items = jax.random.randint(k4, (B, N, L), 0, max_item_num, dtype=jnp.int32)
    interest_items = interest_items.at[:, :, -2:].set(0)   # guarantee some padding slots
    interest_items_cate = jnp.where(
        interest_items == 0, 0,
        jax.random.randint(k5, (B, N, L), 1, n_cates + 1, dtype=jnp.int32))

    ref = valuenet_user_reference(params, user, items, items_cate,
                                  interest_items, interest_items_cate)

    # f32 compute path: validates the algebraic rewrites (tolerance accounts for the
    # TPU's internal matmul precision differing between the XLA reference and Mosaic).
    prep_f32 = prepare_valuenet_weights(params, L, jnp.float32)
    out_f32 = valuenet_user_forward(params, user, items, items_cate,
                                    interest_items, interest_items_cate,
                                    compute_dtype=jnp.float32, prepared=prep_f32)
    out_f32 = jax.block_until_ready(out_f32)
    assert out_f32.shape == (B, 1)
    assert jnp.allclose(out_f32, ref, rtol=1e-2, atol=1e-2), (out_f32, ref)

    # default (bf16 matmul) path: looser tolerance vs the f32 reference.
    prep_bf16 = prepare_valuenet_weights(params, L, jnp.bfloat16)
    out_bf16 = valuenet_user_forward(params, user, items, items_cate,
                                     interest_items, interest_items_cate,
                                     prepared=prep_bf16)
    out_bf16 = jax.block_until_ready(out_bf16)
    assert out_bf16.shape == (B, 1)
    assert jnp.allclose(out_bf16, ref, rtol=1e-1, atol=1e-1), (out_bf16, ref)

    print("KERNEL_OK")
</pallas_src>

<mosaic_0001>
module attributes {stable_mosaic.version = 11 : i64} {
  func.func @_valuenet_kernel(%arg0: i32, %arg1: memref<16x288xf32, #tpu.memory_space<vmem>>, %arg2: memref<288x512xf32, #tpu.memory_space<vmem>>, %arg3: memref<1x512xf32, #tpu.memory_space<vmem>>, %arg4: memref<512x128xf32, #tpu.memory_space<vmem>>, %arg5: memref<32x64xf32, #tpu.memory_space<vmem>>, %arg6: memref<128x64xf32, #tpu.memory_space<vmem>>, %arg7: memref<64x16xf32, #tpu.memory_space<vmem>>, %arg8: memref<5x64xf32, #tpu.memory_space<vmem>>, %arg9: memref<16x1xf32, #tpu.memory_space<vmem>>) attributes {dimension_semantics = [#tpu.dimension_semantics<parallel>], iteration_bounds = array<i64: 1>, scalar_prefetch = 0 : i64, scratch_operands = 0 : i64, tpu.core_type = #tpu.core_type<tc>, window_params = [{transform_indices = @transform_0, window_bounds = array<i64: 16, 288>}, {pipeline_mode = #tpu.pipeline_mode<synchronous>, transform_indices = @transform_1, window_bounds = array<i64: 288, 512>}, {pipeline_mode = #tpu.pipeline_mode<synchronous>, transform_indices = @transform_2, window_bounds = array<i64: 1, 512>}, {pipeline_mode = #tpu.pipeline_mode<synchronous>, transform_indices = @transform_3, window_bounds = array<i64: 512, 128>}, {pipeline_mode = #tpu.pipeline_mode<synchronous>, transform_indices = @transform_4, window_bounds = array<i64: 32, 64>}, {pipeline_mode = #tpu.pipeline_mode<synchronous>, transform_indices = @transform_5, window_bounds = array<i64: 128, 64>}, {pipeline_mode = #tpu.pipeline_mode<synchronous>, transform_indices = @transform_6, window_bounds = array<i64: 64, 16>}, {pipeline_mode = #tpu.pipeline_mode<synchronous>, transform_indices = @transform_7, window_bounds = array<i64: 5, 64>}, {transform_indices = @transform_8, window_bounds = array<i64: 16, 1>}]} {
    %c0 = arith.constant 0 : index
    %c0_0 = arith.constant 0 : index
    %0 = vector.load %arg1[%c0, %c0_0] : memref<16x288xf32, #tpu.memory_space<vmem>>, vector<16x288xf32>
    %c0_1 = arith.constant 0 : index
    %c0_2 = arith.constant 0 : index
    %1 = vector.load %arg8[%c0_1, %c0_2] : memref<5x64xf32, #tpu.memory_space<vmem>>, vector<5x64xf32>
    %c0_3 = arith.constant 0 : index
    %c0_4 = arith.constant 0 : index
    %2 = vector.load %arg2[%c0_3, %c0_4] : memref<288x512xf32, #tpu.memory_space<vmem>>, vector<288x512xf32>
    %cst = arith.constant dense<0.000000e+00> : vector<16x512xf32>
    %3 = tpu.matmul %0, %2, %cst {dimension_numbers = #tpu.dot_dimension_numbers<[1], [0], [0], [1], [0, 0, 1, 1], [], []>} : vector<16x288xf32>, vector<288x512xf32>, vector<16x512xf32> -> vector<16x512xf32>
    %c0_5 = arith.constant 0 : index
    %c0_6 = arith.constant 0 : index
    %4 = vector.load %arg3[%c0_5, %c0_6] : memref<1x512xf32, #tpu.memory_space<vmem>>, vector<1x512xf32>
    %5 = vector.broadcast %4 : vector<1x512xf32> to vector<16x512xf32>
    %6 = arith.addf %3, %5 : vector<16x512xf32>
    %cst_7 = arith.constant 0.000000e+00 : f32
    %7 = vector.broadcast %cst_7 : f32 to vector<16x512xf32>
    %8 = arith.maximumf %6, %7 : vector<16x512xf32>
    %9 = vector.extract_strided_slice %1 {offsets = [3, 0], sizes = [1, 1], strides = [1, 1]} : vector<5x64xf32> to vector<1x1xf32>
    %c0_8 = arith.constant 0 : index
    %c0_9 = arith.constant 0 : index
    %10 = vector.load %arg4[%c0_8, %c0_9] : memref<512x128xf32, #tpu.memory_space<vmem>>, vector<512x128xf32>
    %cst_10 = arith.constant dense<0.000000e+00> : vector<16x128xf32>
    %11 = tpu.matmul %8, %10, %cst_10 {dimension_numbers = #tpu.dot_dimension_numbers<[1], [0], [0], [1], [0, 0, 1, 1], [], []>} : vector<16x512xf32>, vector<512x128xf32>, vector<16x128xf32> -> vector<16x128xf32>
    %12 = vector.broadcast %9 : vector<1x1xf32> to vector<16x128xf32>
    %13 = arith.addf %11, %12 : vector<16x128xf32>
    %14 = vector.extract_strided_slice %0 {offsets = [0, 0], sizes = [16, 128], strides = [1, 1]} : vector<16x288xf32> to vector<16x128xf32>
    %15 = arith.mulf %13, %14 : vector<16x128xf32>
    %16 = vector.extract_strided_slice %0 {offsets = [0, 256], sizes = [16, 32], strides = [1, 1]} : vector<16x288xf32> to vector<16x32xf32>
    %c0_11 = arith.constant 0 : index
    %c0_12 = arith.constant 0 : index
    %17 = vector.load %arg5[%c0_11, %c0_12] : memref<32x64xf32, #tpu.memory_space<vmem>>, vector<32x64xf32>
    %cst_13 = arith.constant dense<0.000000e+00> : vector<16x64xf32>
    %18 = tpu.matmul %16, %17, %cst_13 {dimension_numbers = #tpu.dot_dimension_numbers<[1], [0], [0], [1], [0, 0, 1, 1], [], []>} : vector<16x32xf32>, vector<32x64xf32>, vector<16x64xf32> -> vector<16x64xf32>
    %c0_14 = arith.constant 0 : index
    %c0_15 = arith.constant 0 : index
    %19 = vector.load %arg6[%c0_14, %c0_15] : memref<128x64xf32, #tpu.memory_space<vmem>>, vector<128x64xf32>
    %cst_16 = arith.constant dense<0.000000e+00> : vector<16x64xf32>
    %20 = tpu.matmul %15, %19, %cst_16 {dimension_numbers = #tpu.dot_dimension_numbers<[1], [0], [0], [1], [0, 0, 1, 1], [], []>} : vector<16x128xf32>, vector<128x64xf32>, vector<16x64xf32> -> vector<16x64xf32>
    %21 = arith.addf %18, %20 : vector<16x64xf32>
    %22 = vector.extract_strided_slice %1 {offsets = [0, 0], sizes = [1, 64], strides = [1, 1]} : vector<5x64xf32> to vector<1x64xf32>
    %23 = vector.broadcast %22 : vector<1x64xf32> to vector<16x64xf32>
    %24 = arith.addf %21, %23 : vector<16x64xf32>
    %cst_17 = arith.constant 0.000000e+00 : f32
    %25 = vector.broadcast %cst_17 : f32 to vector<16x64xf32>
    %26 = arith.maximumf %24, %25 : vector<16x64xf32>
    %c0_18 = arith.constant 0 : index
    %c0_19 = arith.constant 0 : index
    %27 = vector.load %arg7[%c0_18, %c0_19] : memref<64x16xf32, #tpu.memory_space<vmem>>, vector<64x16xf32>
    %cst_20 = arith.constant dense<0.000000e+00> : vector<16x16xf32>
    %28 = tpu.matmul %26, %27, %cst_20 {dimension_numbers = #tpu.dot_dimension_numbers<[1], [0], [0], [1], [0, 0, 1, 1], [], []>} : vector<16x64xf32>, vector<64x16xf32>, vector<16x16xf32> -> vector<16x16xf32>
    %29 = vector.extract_strided_slice %1 {offsets = [1, 0], sizes = [1, 16], strides = [1, 1]} : vector<5x64xf32> to vector<1x16xf32>
    %30 = vector.broadcast %29 : vector<1x16xf32> to vector<16x16xf32>
    %31 = arith.addf %28, %30 : vector<16x16xf32>
    %cst_21 = arith.constant 0.000000e+00 : f32
    %32 = vector.broadcast %cst_21 : f32 to vector<16x16xf32>
    %33 = arith.maximumf %31, %32 : vector<16x16xf32>
    %34 = vector.extract_strided_slice %1 {offsets = [2, 0], sizes = [1, 16], strides = [1, 1]} : vector<5x64xf32> to vector<1x16xf32>
    %35 = vector.broadcast %34 : vector<1x16xf32> to vector<16x16xf32>
    %36 = arith.mulf %33, %35 : vector<16x16xf32>
    %cst_22 = arith.constant dense<0.000000e+00> : vector<16xf32>
    %37 = vector.multi_reduction <add>, %36, %cst_22 [1] : vector<16x16xf32> to vector<16xf32>
    %38 = vector.shape_cast %37 : vector<16xf32> to vector<16x1xf32>
    %39 = vector.extract_strided_slice %1 {offsets = [4, 0], sizes = [1, 1], strides = [1, 1]} : vector<5x64xf32> to vector<1x1xf32>
    %40 = vector.broadcast %39 : vector<1x1xf32> to vector<16x1xf32>
    %41 = arith.addf %38, %40 : vector<16x1xf32>
    %c0_23 = arith.constant 0 : index
    %c0_24 = arith.constant 0 : index
    %42 = vector.load %arg9[%c0_23, %c0_24] : memref<16x1xf32, #tpu.memory_space<vmem>>, vector<16x1xf32>
    tpu.vector_store %arg9[%c0_23, %c0_24], %41 {strides = array<i32>} : memref<16x1xf32, #tpu.memory_space<vmem>>, vector<16x1xf32>,
    return
  }
  func.func @transform_0(%arg0: i32) -> (i32, i32) {
    %c0_i32 = arith.constant 0 : i32
    %c0_i32_0 = arith.constant 0 : i32
    return %arg0, %c0_i32 : i32, i32
  }
  func.func @transform_1(%arg0: i32) -> (i32, i32) {
    %c0_i32 = arith.constant 0 : i32
    %c0_i32_0 = arith.constant 0 : i32
    %c0_i32_1 = arith.constant 0 : i32
    return %c0_i32, %c0_i32_0 : i32, i32
  }
  func.func @transform_2(%arg0: i32) -> (i32, i32) {
    %c0_i32 = arith.constant 0 : i32
    %c0_i32_0 = arith.constant 0 : i32
    %c0_i32_1 = arith.constant 0 : i32
    return %c0_i32, %c0_i32_0 : i32, i32
  }
  func.func @transform_3(%arg0: i32) -> (i32, i32) {
    %c0_i32 = arith.constant 0 : i32
    %c0_i32_0 = arith.constant 0 : i32
    %c0_i32_1 = arith.constant 0 : i32
    return %c0_i32, %c0_i32_0 : i32, i32
  }
  func.func @transform_4(%arg0: i32) -> (i32, i32) {
    %c0_i32 = arith.constant 0 : i32
    %c0_i32_0 = arith.constant 0 : i32
    %c0_i32_1 = arith.constant 0 : i32
    return %c0_i32, %c0_i32_0 : i32, i32
  }
  func.func @transform_5(%arg0: i32) -> (i32, i32) {
    %c0_i32 = arith.constant 0 : i32
    %c0_i32_0 = arith.constant 0 : i32
    %c0_i32_1 = arith.constant 0 : i32
    return %c0_i32, %c0_i32_0 : i32, i32
  }
  func.func @transform_6(%arg0: i32) -> (i32, i32) {
    %c0_i32 = arith.constant 0 : i32
    %c0_i32_0 = arith.constant 0 : i32
    %c0_i32_1 = arith.constant 0 : i32
    return %c0_i32, %c0_i32_0 : i32, i32
  }
  func.func @transform_7(%arg0: i32) -> (i32, i32) {
    %c0_i32 = arith.constant 0 : i32
    %c0_i32_0 = arith.constant 0 : i32
    %c0_i32_1 = arith.constant 0 : i32
    return %c0_i32, %c0_i32_0 : i32, i32
  }
  func.func @transform_8(%arg0: i32) -> (i32, i32) {
    %c0_i32 = arith.constant 0 : i32
    %c0_i32_0 = arith.constant 0 : i32
    return %arg0, %c0_i32 : i32, i32
  }
}

</mosaic_0001>

<bundles_post_ra>
// kernel: tpu_custom_call.1
= control target key start
LH: loop header
LB: loop body
LE: loop exit
PB: predicated region body
PF: predicated region fallthrough
CT: control target
= control target key end

     0   :  { %13 = vsyncpa [#allocation3], 0  ;;  %s1116_s0 = inlined_call_operand.vmem [shape: f32[16,288], index: 0, kind: input, shape index: {}]   ;;  %s1117_s1 = inlined_call_operand.hbm [shape: f32[288,512], index: 1, kind: input, shape index: {}]   ;;  %s1118_s2 = inlined_call_operand.vmem [shape: f32[1,512], index: 2, kind: input, shape index: {}]   ;;  %s1119_s3 = inlined_call_operand.hbm [shape: f32[512,128], index: 3, kind: input, shape index: {}]   ;;  %s1120_s4 = inlined_call_operand.vmem [shape: f32[32,64], index: 4, kind: input, shape index: {}]   ;;  %s1121_s5 = inlined_call_operand.vmem [shape: f32[128,64], index: 5, kind: input, shape index: {}]   ;;  %s1122_s6 = inlined_call_operand.vmem [shape: f32[64,16], index: 6, kind: input, shape index: {}]   ;;  %s1123_s7 = inlined_call_operand.vmem [shape: f32[5,64], index: 7, kind: input, shape index: {}]   ;;  %s1124_s8 = inlined_call_operand.vmem [shape: f32[16,1], index: 8, kind: output, shape index: {}]  }
   0x1   :  { %s21_s29 = sshll.u32 %s1117_s1, 4  ;;  %s22_s29 = int_to_ptr.hbm [resolvable:$true] %s21_s29 }
   0x2   :  { %14 = vsyncpa [#allocation5], 0  ;;  %s882_s30 = smov [#allocation2]   ;;  %s36_s12 = sshll.u32 %s1119_s3, 4  ;;  %s37_s12 = int_to_ptr.hbm [resolvable:$true] %s36_s12 }
   0x3   :  { %s23_s9 = sshll.u32 %s882_s30, 4  ;;  %s883_s13 = smov 512   ;;  %s24_s9 = int_to_ptr.vmem [resolvable:$true] %s23_s9 }
   0x4   :  { %s884_s14 = smov 32   ;;  %s885_s15 = smov [#allocation4]  }
   0x5   :  { %29 = dma.hbm_to_vmem [thread:$0]  %s22_s29, 18432, %s24_s9, [#allocation3], %s883_s13, %s883_s13, %s884_s14  }
   0x6   :  { %s38_s16 = sshll.u32 %s885_s15, 4  ;;  %s886_s17 = smov 128   ;;  %s39_s16 = int_to_ptr.vmem [resolvable:$true] %s38_s16 }
   0x7   :  { %s887_s18 = smov 8  }
   0x8   :  { %44 = dma.hbm_to_vmem [thread:$0]  %s37_s12, 8192, %s39_s16, [#allocation5], %s886_s17, %s886_s17, %s887_s18  }
   0x9   :  { %878 = dma.done.wait [#allocation3], 18432  }
   0xa   :  { %879 = vsyncadd [#allocation3], 4294948864 }
   0xb   :  { %880 = dma.done.wait [#allocation5], 8192  }
   0xc   :  { %881 = vsyncadd [#allocation5], 4294959104  ;;  %v128_v0 = vld [vmem:[#allocation2 + $0x1e0] sm:$0xff]  ;;  %v129_v2 = vld [vmem:[#allocation2 + $0x1e8] sm:$0xff]  ;;  %vm222_vm0 = vcmask 261120   ;;  %vm756_vm1 = vcmask 523264  }
   0xd   :  { %v208_v1 = vld [vmem:[#allocation2 + $0x460] sm:$0xff]  ;;  %229 = vmatpush.msra.mxu0 %v128_v0  ;;  %298 = vmatpush.msra.mxu3 %v129_v2  ;;  %v125_v6 = vld [vmem:[#allocation2 + $0x1c8] sm:$0xff]  ;;  %v942_v47 = vld [vmem:[%s1116_s0 + $0x10] sm:$0xff]  ;;  %vm791_vm2 = vcmask 130048   ;;  %vm801_vm3 = vcmask 7168  }
   0xe   :  { %287 = vmatpush.msra.mxu2 %v208_v1  ;;  %v124_v3 = vld [vmem:[#allocation2 + $0x1c0] sm:$0xff]  ;;  %v121_v10 = vld [vmem:[#allocation2 + $0x1a8] sm:$0xff] }
   0xf   :  { %v192_v4 = vld [vmem:[#allocation2 + $0x3e0] sm:$0xff]  ;;  %230 = vmatpush.msra.mxu0 %v124_v3  ;;  %299 = vmatpush.msra.mxu3 %v125_v6  ;;  %v117_v14 = vld [vmem:[#allocation2 + $0x188] sm:$0xff]  ;;  %v194_v3 = vld [vmem:[#allocation2 + $0x3f0] sm:$0xff] }
  0x10   :  { %v204_v5 = vld [vmem:[#allocation2 + $0x440] sm:$0xff]  ;;  %252 = vmatpush.msra.mxu1 %v192_v4  ;;  %v193_v15 = vld [vmem:[#allocation2 + $0x3e8] sm:$0xff] }
  0x11   :  { %v120_v7 = vld [vmem:[#allocation2 + $0x1a0] sm:$0xff]  ;;  %288 = vmatpush.msra.mxu2 %v204_v5  ;;  %300 = vmatpush.msra.mxu3 %v121_v10  ;;  %v113_v18 = vld [vmem:[#allocation2 + $0x168] sm:$0xff] }
  0x12   :  { %v188_v8 = vld [vmem:[#allocation2 + $0x3c0] sm:$0xff]  ;;  %231 = vmatpush.msra.mxu0 %v120_v7  ;;  %v189_v19 = vld [vmem:[#allocation2 + $0x3c8] sm:$0xff]  ;;  %v190_v7 = vld [vmem:[#allocation2 + $0x3d0] sm:$0xff] }
  0x13   :  { %v200_v9 = vld [vmem:[#allocation2 + $0x420] sm:$0xff]  ;;  %253 = vmatpush.msra.mxu1 %v188_v8  ;;  %301 = vmatpush.msra.mxu3 %v117_v14  ;;  %v109_v22 = vld [vmem:[#allocation2 + $0x148] sm:$0xff]  ;;  %v130_v8 = vld [vmem:[#allocation2 + $0x1f0] sm:$0xff] }
  0x14   :  { %v116_v11 = vld [vmem:[#allocation2 + $0x180] sm:$0xff]  ;;  %289 = vmatpush.msra.mxu2 %v200_v9  ;;  %v185_v23 = vld [vmem:[#allocation2 + $0x3a8] sm:$0xff] }
  0x15   :  { %v184_v12 = vld [vmem:[#allocation2 + $0x3a0] sm:$0xff]  ;;  %232 = vmatpush.msra.mxu0 %v116_v11  ;;  %302 = vmatpush.msra.mxu3 %v113_v18  ;;  %v105_v26 = vld [vmem:[#allocation2 + $0x128] sm:$0xff]  ;;  %v186_v11 = vld [vmem:[#allocation2 + $0x3b0] sm:$0xff] }
  0x16   :  { %v196_v13 = vld [vmem:[#allocation2 + $0x400] sm:$0xff]  ;;  %254 = vmatpush.msra.mxu1 %v184_v12  ;;  %v181_v27 = vld [vmem:[#allocation2 + $0x388] sm:$0xff]  ;;  %v126_v12 = vld [vmem:[#allocation2 + $0x1d0] sm:$0xff] }
  0x17   :  { %v112_v16 = vld [vmem:[#allocation2 + $0x160] sm:$0xff]  ;;  %290 = vmatpush.msra.mxu2 %v196_v13  ;;  %303 = vmatpush.msra.mxu3 %v109_v22  ;;  %v101_v30 = vld [vmem:[#allocation2 + $0x108] sm:$0xff]  ;;  %v122_v18 = vld [vmem:[#allocation2 + $0x1b0] sm:$0xff] }
  0x18   :  { %v180_v17 = vld [vmem:[#allocation2 + $0x380] sm:$0xff]  ;;  %233 = vmatpush.msra.mxu0 %v112_v16  ;;  %v177_v31 = vld [vmem:[#allocation2 + $0x368] sm:$0xff]  ;;  %810 = vmatmul.msk.f32.vlgmr.msra.gmra.mxu2 %vm222_vm0, %v942_v47  ;;  %v210_v16 = vld [vmem:[#allocation2 + $0x470] sm:$0xff] }
  0x19   :  { %321 = vmatpush.msrb.mxu2 %v193_v15  ;;  %v108_v20 = vld [vmem:[#allocation2 + $0x140] sm:$0xff]  ;;  %255 = vmatpush.msra.mxu1 %v180_v17  ;;  %v97_v34 = vld [vmem:[#allocation2 + $0xe8] sm:$0xff]  ;;  %v182_v15 = vld [vmem:[#allocation2 + $0x390] sm:$0xff] }
  0x1a   :  { %v176_v21 = vld [vmem:[#allocation2 + $0x360] sm:$0xff]  ;;  %234 = vmatpush.msra.mxu0 %v108_v20  ;;  %304 = vmatpush.msra.mxu3 %v105_v26  ;;  %v173_v35 = vld [vmem:[#allocation2 + $0x348] sm:$0xff]  ;;  %v969_v17 = vld [vmem:[%s1116_s0 + $0x18] sm:$0xff] }
  0x1b   :  { %322 = vmatpush.msrb.mxu2 %v189_v19  ;;  %v104_v24 = vld [vmem:[#allocation2 + $0x120] sm:$0xff]  ;;  %256 = vmatpush.msra.mxu1 %v176_v21  ;;  %v93_v38 = vld [vmem:[#allocation2 + $0xc8] sm:$0xff]  ;;  %v178_v19 = vld [vmem:[#allocation2 + $0x370] sm:$0xff] }
  0x1c   :  { %v172_v25 = vld [vmem:[#allocation2 + $0x340] sm:$0xff]  ;;  %235 = vmatpush.msra.mxu0 %v104_v24  ;;  %305 = vmatpush.msra.mxu3 %v101_v30  ;;  %v169_v39 = vld [vmem:[#allocation2 + $0x328] sm:$0xff]  ;;  %v206_v20 = vld [vmem:[#allocation2 + $0x450] sm:$0xff] }
  0x1d   :  { %323 = vmatpush.msrb.mxu2 %v185_v23  ;;  %v100_v28 = vld [vmem:[#allocation2 + $0x100] sm:$0xff]  ;;  %257 = vmatpush.msra.mxu1 %v172_v25  ;;  %v89_v42 = vld [vmem:[#allocation2 + $0xa8] sm:$0xff]  ;;  %v118_v22 = vld [vmem:[#allocation2 + $0x190] sm:$0xff] }
  0x1e   :  { %v168_v29 = vld [vmem:[#allocation2 + $0x320] sm:$0xff]  ;;  %236 = vmatpush.msra.mxu0 %v100_v28  ;;  %306 = vmatpush.msra.mxu3 %v97_v34  ;;  %v165_v43 = vld [vmem:[#allocation2 + $0x308] sm:$0xff]  ;;  %v174_v23 = vld [vmem:[#allocation2 + $0x350] sm:$0xff] }
  0x1f   :  { %324 = vmatpush.msrb.mxu2 %v181_v27  ;;  %v96_v32 = vld [vmem:[#allocation2 + $0xe0] sm:$0xff]  ;;  %258 = vmatpush.msra.mxu1 %v168_v29  ;;  %v85_v46 = vld [vmem:[#allocation2 + $0x88] sm:$0xff]  ;;  %v202_v24 = vld [vmem:[#allocation2 + $0x430] sm:$0xff] }
  0x20   :  { %v164_v33 = vld [vmem:[#allocation2 + $0x300] sm:$0xff]  ;;  %237 = vmatpush.msra.mxu0 %v96_v32  ;;  %307 = vmatpush.msra.mxu3 %v93_v38  ;;  %v161_v48 = vld [vmem:[#allocation2 + $0x2e8] sm:$0xff]  ;;  %v114_v26 = vld [vmem:[#allocation2 + $0x170] sm:$0xff] }
  0x21   :  { %325 = vmatpush.msrb.mxu2 %v177_v31  ;;  %v92_v36 = vld [vmem:[#allocation2 + $0xc0] sm:$0xff]  ;;  %259 = vmatpush.msra.mxu1 %v164_v33  ;;  %v81_v51 = vld [vmem:[#allocation2 + $0x68] sm:$0xff]  ;;  %v170_v27 = vld [vmem:[#allocation2 + $0x330] sm:$0xff] }
  0x22   :  { %v160_v37 = vld [vmem:[#allocation2 + $0x2e0] sm:$0xff]  ;;  %238 = vmatpush.msra.mxu0 %v92_v36  ;;  %308 = vmatpush.msra.mxu3 %v89_v42  ;;  %v157_v52 = vld [vmem:[#allocation2 + $0x2c8] sm:$0xff]  ;;  %v198_v28 = vld [vmem:[#allocation2 + $0x410] sm:$0xff] }
  0x23   :  { %326 = vmatpush.msrb.mxu2 %v173_v35  ;;  %v88_v40 = vld [vmem:[#allocation2 + $0xa0] sm:$0xff]  ;;  %260 = vmatpush.msra.mxu1 %v160_v37  ;;  %v77_v55 = vld [vmem:[#allocation2 + $0x48] sm:$0xff]  ;;  %v110_v29 = vld [vmem:[#allocation2 + $0x150] sm:$0xff] }
  0x24   :  { %v156_v41 = vld [vmem:[#allocation2 + $0x2c0] sm:$0xff]  ;;  %239 = vmatpush.msra.mxu0 %v88_v40  ;;  %309 = vmatpush.msra.mxu3 %v85_v46  ;;  %v153_v56 = vld [vmem:[#allocation2 + $0x2a8] sm:$0xff]  ;;  %v166_v30 = vld [vmem:[#allocation2 + $0x310] sm:$0xff] }
  0x25   :  { %327 = vmatpush.msrb.mxu2 %v169_v39  ;;  %v84_v44 = vld [vmem:[#allocation2 + $0x80] sm:$0xff]  ;;  %261 = vmatpush.msra.mxu1 %v156_v41  ;;  %v73_v59 = vld [vmem:[#allocation2 + $0x28] sm:$0xff]  ;;  %v195_v31 = vld [vmem:[#allocation2 + $0x3f8] sm:$0xff] }
  0x26   :  { %v152_v45 = vld [vmem:[#allocation2 + $0x2a0] sm:$0xff]  ;;  %240 = vmatpush.msra.mxu0 %v84_v44  ;;  %310 = vmatpush.msra.mxu3 %v81_v51  ;;  %v149_v60 = vld [vmem:[#allocation2 + $0x288] sm:$0xff]  ;;  %v106_v33 = vld [vmem:[#allocation2 + $0x130] sm:$0xff] }
  0x27   :  { %328 = vmatpush.msrb.mxu2 %v165_v43  ;;  %v80_v49 = vld [vmem:[#allocation2 + $0x60] sm:$0xff]  ;;  %262 = vmatpush.msra.mxu1 %v152_v45  ;;  %v69_v63 = vld [vmem:[#allocation2 + $0x8] sm:$0xff]  ;;  %v162_v34 = vld [vmem:[#allocation2 + $0x2f0] sm:$0xff] }
  0x28   :  { %v148_v50 = vld [vmem:[#allocation2 + $0x280] sm:$0xff]  ;;  %241 = vmatpush.msra.mxu0 %v80_v49  ;;  %311 = vmatpush.msra.mxu3 %v77_v55  ;;  %v954_v1 = vld [vmem:[%s1116_s0 + $0x28] sm:$0xff]  ;;  %v191_v35 = vld [vmem:[#allocation2 + $0x3d8] sm:$0xff] }
  0x29   :  { %v76_v53 = vld [vmem:[#allocation2 + $0x40] sm:$0xff]  ;;  %329 = vmatpush.msrb.mxu2 %v161_v48  ;;  %263 = vmatpush.msra.mxu1 %v148_v50  ;;  %v145_v2 = vld [vmem:[#allocation2 + $0x268] sm:$0xff]  ;;  %v131_v36 = vld [vmem:[#allocation2 + $0x1f8] sm:$0xff] }
  0x2a   :  { %v144_v54 = vld [vmem:[#allocation2 + $0x260] sm:$0xff]  ;;  %242 = vmatpush.msra.mxu0 %v76_v53  ;;  %312 = vmatpush.msra.mxu3 %v73_v59  ;;  %v962_v5 = vld [vmem:[%s1116_s0 + $0x8] sm:$0xff]  ;;  %v102_v37 = vld [vmem:[#allocation2 + $0x110] sm:$0xff] }
  0x2b   :  { %v72_v57 = vld [vmem:[#allocation2 + $0x20] sm:$0xff]  ;;  %330 = vmatpush.msrb.mxu2 %v157_v52  ;;  %264 = vmatpush.msra.mxu1 %v144_v54  ;;  %v141_v6 = vld [vmem:[#allocation2 + $0x248] sm:$0xff]  ;;  %v158_v38 = vld [vmem:[#allocation2 + $0x2d0] sm:$0xff] }
  0x2c   :  { %v140_v58 = vld [vmem:[#allocation2 + $0x240] sm:$0xff]  ;;  %243 = vmatpush.msra.mxu0 %v72_v57  ;;  %313 = vmatpush.msra.mxu3 %v69_v63  ;;  %v137_v9 = vld [vmem:[#allocation2 + $0x228] sm:$0xff]  ;;  %v187_v39 = vld [vmem:[#allocation2 + $0x3b8] sm:$0xff] }
  0x2d   :  { %v68_v61 = vld [vmem:[#allocation2] sm:$0xff]  ;;  %331 = vmatpush.msrb.mxu2 %v153_v56  ;;  %265 = vmatpush.msra.mxu1 %v140_v58  ;;  %v209_v10 = vld [vmem:[#allocation2 + $0x468] sm:$0xff]  ;;  %v127_v40 = vld [vmem:[#allocation2 + $0x1d8] sm:$0xff] }
  0x2e   :  { %v136_v62 = vld [vmem:[#allocation2 + $0x220] sm:$0xff]  ;;  %244 = vmatpush.msra.mxu0 %v68_v61  ;;  %811 = vmatmul.msk.f32.gmra.mxu2 %vm222_vm0, %v954_v1  ;;  %v133_v13 = vld [vmem:[#allocation2 + $0x208] sm:$0xff]  ;;  %v98_v41 = vld [vmem:[#allocation2 + $0xf0] sm:$0xff] }
  0x2f   :  { %v949_v0 = vld [vmem:[%s1116_s0] sm:$0xff]  ;;  %332 = vmatpush.msrb.mxu2 %v149_v60  ;;  %266 = vmatpush.msra.mxu1 %v136_v62  ;;  %v205_v14 = vld [vmem:[#allocation2 + $0x448] sm:$0xff]  ;;  %v154_v42 = vld [vmem:[#allocation2 + $0x2b0] sm:$0xff] }
  0x30   :  { %v132_v4 = vld [vmem:[#allocation2 + $0x200] sm:$0xff]  ;;  %245 = vmatmul.f32.vlgmr.msra.gmra.mxu0 %v949_v0  ;;  %390 = vmatpush.msrb.mxu3 %v194_v3  ;;  %v201_v25 = vld [vmem:[#allocation2 + $0x428] sm:$0xff]  ;;  %v183_v43 = vld [vmem:[#allocation2 + $0x398] sm:$0xff] }
  0x31   :  { %333 = vmatpush.msrb.mxu2 %v145_v2  ;;  %267 = vmatpush.msra.mxu1 %v132_v4  ;;  %v974_v21 = vld [vmem:[%s1116_s0 + $0x20] sm:$0xff]  ;;  %v197_v32 = vld [vmem:[#allocation2 + $0x408] sm:$0xff]  ;;  %v123_v44 = vld [vmem:[#allocation2 + $0x1b8] sm:$0xff] }
  0x32   :  { %314 = vmatmul.f32.vlgmr.msra.gmra.mxu3 %v949_v0  ;;  %268 = vmatmul.f32.vlgmr.msra.gmra.mxu1 %v962_v5  ;;  %v94_v45 = vld [vmem:[#allocation2 + $0xd0] sm:$0xff]  ;;  %v179_v48 = vld [vmem:[#allocation2 + $0x378] sm:$0xff] }
  0x33   :  { %334 = vmatpush.msrb.mxu2 %v141_v6  ;;  %391 = vmatpush.msrb.mxu3 %v190_v7  ;;  %v150_v46 = vld [vmem:[#allocation2 + $0x290] sm:$0xff]  ;;  %v119_v51 = vld [vmem:[#allocation2 + $0x198] sm:$0xff] }
  0x34   :  { %367 = vmatpush.msrb.mxu1 %v130_v8  ;;  %356 = vmatpush.msrb.mxu0 %v209_v10  ;;  %v90_v49 = vld [vmem:[#allocation2 + $0xb0] sm:$0xff]  ;;  %v175_v52 = vld [vmem:[#allocation2 + $0x358] sm:$0xff] }
  0x35   :  { %335 = vmatpush.msrb.mxu2 %v137_v9  ;;  %392 = vmatpush.msrb.mxu3 %v186_v11  ;;  %v146_v50 = vld [vmem:[#allocation2 + $0x270] sm:$0xff]  ;;  %v115_v55 = vld [vmem:[#allocation2 + $0x178] sm:$0xff] }
  0x36   :  { %368 = vmatpush.msrb.mxu1 %v126_v12  ;;  %357 = vmatpush.msrb.mxu0 %v205_v14  ;;  %v86_v53 = vld [vmem:[#allocation2 + $0x90] sm:$0xff]  ;;  %v171_v56 = vld [vmem:[#allocation2 + $0x338] sm:$0xff] }
  0x37   :  { %336 = vmatpush.msrb.mxu2 %v133_v13  ;;  %393 = vmatpush.msrb.mxu3 %v182_v15  ;;  %v142_v54 = vld [vmem:[#allocation2 + $0x250] sm:$0xff]  ;;  %v111_v59 = vld [vmem:[#allocation2 + $0x158] sm:$0xff] }
  0x38   :  { %248 = vmatmul.f32.gmra.mxu0 %v969_v17  ;;  %337 = vmatmul.f32.vlgmr.msrb.gmra.mxu2 %v962_v5  ;;  %v82_v57 = vld [vmem:[#allocation2 + $0x70] sm:$0xff]  ;;  %v167_v60 = vld [vmem:[#allocation2 + $0x318] sm:$0xff] }
  0x39   :  { %425 = vmatpush.msra.mxu2 %v210_v16  ;;  %369 = vmatpush.msrb.mxu1 %v122_v18  ;;  %v138_v58 = vld [vmem:[#allocation2 + $0x230] sm:$0xff]  ;;  %v107_v63 = vld [vmem:[#allocation2 + $0x138] sm:$0xff] }
  0x3a   :  { %394 = vmatpush.msrb.mxu3 %v178_v19  ;;  %271 = vmatmul.f32.gmra.mxu1 %v974_v21  ;;  %v78_v61 = vld [vmem:[#allocation2 + $0x50] sm:$0xff]  ;;  %v163_v2 = vld [vmem:[#allocation2 + $0x2f8] sm:$0xff] }
  0x3b   :  { %426 = vmatpush.msra.mxu2 %v206_v20  ;;  %370 = vmatpush.msrb.mxu1 %v118_v22  ;;  %v134_v62 = vld [vmem:[#allocation2 + $0x210] sm:$0xff]  ;;  %v103_v4 = vld [vmem:[#allocation2 + $0x118] sm:$0xff]  ;;  %v526_v22 = vld [vmem:[#allocation4 + $0x68] sm:$0xff] }
  0x3c   :  { %395 = vmatpush.msrb.mxu3 %v174_v23  ;;  %358 = vmatpush.msrb.mxu0 %v201_v25  ;;  %v74_v3 = vld [vmem:[#allocation2 + $0x30] sm:$0xff]  ;;  %v159_v6 = vld [vmem:[#allocation2 + $0x2d8] sm:$0xff] }
  0x3d   :  { %427 = vmatpush.msra.mxu2 %v202_v24  ;;  %371 = vmatpush.msrb.mxu1 %v114_v26  ;;  %v528_v7 = vld [vmem:[#allocation4 + $0x78] sm:$0xff]  ;;  %v70_v8 = vld [vmem:[#allocation2 + $0x10] sm:$0xff] }
  0x3e   :  { %396 = vmatpush.msrb.mxu3 %v170_v27  ;;  %359 = vmatpush.msrb.mxu0 %v197_v32  ;;  %v99_v9 = vld [vmem:[#allocation2 + $0xf8] sm:$0xff]  ;;  %v527_v14 = vld [vmem:[#allocation4 + $0x70] sm:$0xff] }
  0x3f   :  { %428 = vmatpush.msra.mxu2 %v198_v28  ;;  %317 = vmatmul.f32.gmra.mxu3 %v969_v17  ;;  %v155_v10 = vld [vmem:[#allocation2 + $0x2b8] sm:$0xff] }
  0x40   :  { %372 = vmatpush.msrb.mxu1 %v110_v29  ;;  %397 = vmatpush.msrb.mxu3 %v166_v30  ;;  %v95_v11 = vld [vmem:[#allocation2 + $0xd8] sm:$0xff]  ;;  %v525_v29 = vld [vmem:[#allocation4 + $0x60] sm:$0xff] }
  0x41   :  { %459 = vmatpush.msrb.mxu2 %v195_v31  ;;  %812 = vmatmul.msk.f32.vlgmr.msrb.gmra.mxu0 %vm222_vm0, %v942_v47  ;;  %v211_v12 = vld [vmem:[#allocation2 + $0x478] sm:$0xff] }
  0x42   :  { %340 = vmatmul.f32.gmra.mxu2 %v974_v21  ;;  %373 = vmatpush.msrb.mxu1 %v106_v33  ;;  %v151_v13 = vld [vmem:[#allocation2 + $0x298] sm:$0xff]  ;;  %v523_v33 = vld [vmem:[#allocation4 + $0x50] sm:$0xff] }
  0x43   :  { %398 = vmatpush.msrb.mxu3 %v162_v34  ;;  %460 = vmatpush.msrb.mxu2 %v191_v35  ;;  %v91_v15 = vld [vmem:[#allocation2 + $0xb8] sm:$0xff]  ;;  %v522_v35 = vld [vmem:[#allocation4 + $0x48] sm:$0xff] }
  0x44   :  { %436 = vmatpush.msra.mxu0 %v131_v36  ;;  %374 = vmatpush.msrb.mxu1 %v102_v37  ;;  %v147_v16 = vld [vmem:[#allocation2 + $0x278] sm:$0xff]  ;;  %v543_v36 = vld [vmem:[#allocation4 + $0xf0] sm:$0xff]  ;;  %v521_v37 = vld [vmem:[#allocation4 + $0x40] sm:$0xff] }
  0x45   :  { %399 = vmatpush.msrb.mxu3 %v158_v38  ;;  %461 = vmatpush.msrb.mxu2 %v187_v39  ;;  %v87_v18 = vld [vmem:[#allocation2 + $0x98] sm:$0xff]  ;;  %v542_v38 = vld [vmem:[#allocation4 + $0xe8] sm:$0xff] }
  0x46   :  { %437 = vmatpush.msra.mxu0 %v127_v40  ;;  %375 = vmatpush.msrb.mxu1 %v98_v41  ;;  %v207_v19 = vld [vmem:[#allocation2 + $0x458] sm:$0xff]  ;;  %v519_v40 = vld [vmem:[#allocation4 + $0x30] sm:$0xff]  ;;  %v518_v41 = vld [vmem:[#allocation4 + $0x28] sm:$0xff] }
  0x47   :  { %400 = vmatpush.msrb.mxu3 %v154_v42  ;;  %462 = vmatpush.msrb.mxu2 %v183_v43  ;;  %v143_v20 = vld [vmem:[#allocation2 + $0x258] sm:$0xff]  ;;  %v517_v43 = vld [vmem:[#allocation4 + $0x20] sm:$0xff] }
  0x48   :  { %438 = vmatpush.msra.mxu0 %v123_v44  ;;  %376 = vmatpush.msrb.mxu1 %v94_v45  ;;  %v83_v23 = vld [vmem:[#allocation2 + $0x78] sm:$0xff]  ;;  %v539_v44 = vld [vmem:[#allocation4 + $0xd0] sm:$0xff] }
  0x49   :  { %401 = vmatpush.msrb.mxu3 %v150_v46  ;;  %463 = vmatpush.msrb.mxu2 %v179_v48  ;;  %v203_v24 = vld [vmem:[#allocation2 + $0x438] sm:$0xff]  ;;  %v515_v46 = vld [vmem:[#allocation4 + $0x10] sm:$0xff]  ;;  %v537_v48 = vld [vmem:[#allocation4 + $0xc0] sm:$0xff] }
  0x4a   :  { %813 = vmatmul.msk.f32.gmra.mxu0 %vm222_vm0, %v954_v1  ;;  %377 = vmatpush.msrb.mxu1 %v90_v49  ;;  %v139_v25 = vld [vmem:[#allocation2 + $0x238] sm:$0xff]  ;;  %v514_v49 = vld [vmem:[#allocation4 + $0x8] sm:$0xff] }
  0x4b   :  { %402 = vmatpush.msrb.mxu3 %v146_v50  ;;  %439 = vmatpush.msra.mxu0 %v119_v51  ;;  %v79_v26 = vld [vmem:[#allocation2 + $0x58] sm:$0xff]  ;;  %v513_v51 = vld [vmem:[#allocation4] sm:$0xff] }
  0x4c   :  { %464 = vmatpush.msrb.mxu2 %v175_v52  ;;  %378 = vmatpush.msrb.mxu1 %v86_v53  ;;  %v199_v27 = vld [vmem:[#allocation2 + $0x418] sm:$0xff]  ;;  %v535_v52 = vld [vmem:[#allocation4 + $0xb0] sm:$0xff]  ;;  %v534_v53 = vld [vmem:[#allocation4 + $0xa8] sm:$0xff] }
  0x4d   :  { %403 = vmatpush.msrb.mxu3 %v142_v54  ;;  %440 = vmatpush.msra.mxu0 %v115_v55  ;;  %v135_v28 = vld [vmem:[#allocation2 + $0x218] sm:$0xff]  ;;  %v533_v55 = vld [vmem:[#allocation4 + $0xa0] sm:$0xff] }
  0x4e   :  { %465 = vmatpush.msrb.mxu2 %v171_v56  ;;  %379 = vmatpush.msrb.mxu1 %v82_v57  ;;  %v75_v30 = vld [vmem:[#allocation2 + $0x38] sm:$0xff]  ;;  %v559_v57 = vld [vmem:[#allocation4 + $0x170] sm:$0xff] }
  0x4f   :  { %404 = vmatpush.msrb.mxu3 %v138_v58  ;;  %441 = vmatpush.msra.mxu0 %v111_v59  ;;  %v524_v31 = vld [vmem:[#allocation4 + $0x58] sm:$0xff]  ;;  %v531_v58 = vld [vmem:[#allocation4 + $0x90] sm:$0xff]  ;;  %v558_v59 = vld [vmem:[#allocation4 + $0x168] sm:$0xff] }
  0x50   :  { %466 = vmatpush.msrb.mxu2 %v167_v60  ;;  %380 = vmatpush.msrb.mxu1 %v78_v61  ;;  %v71_v32 = vld [vmem:[#allocation2 + $0x18] sm:$0xff]  ;;  %v530_v60 = vld [vmem:[#allocation4 + $0x88] sm:$0xff]  ;;  %v557_v61 = vld [vmem:[#allocation4 + $0x160] sm:$0xff] }
  0x51   :  { %814 = vmatmul.msk.f32.vlgmr.msra.gmra.mxu2 %vm222_vm0, %v942_v47  ;;  %405 = vmatpush.msrb.mxu3 %v134_v62  ;;  %v544_v34 = vld [vmem:[#allocation4 + $0xf8] sm:$0xff]  ;;  %v529_v62 = vld [vmem:[#allocation4 + $0x80] sm:$0xff] }
  0x52   :  { %442 = vmatpush.msra.mxu0 %v107_v63  ;;  %467 = vmatpush.msrb.mxu2 %v163_v2  ;;  %v520_v39 = vld [vmem:[#allocation4 + $0x38] sm:$0xff]  ;;  %v555_v2 = vld [vmem:[#allocation4 + $0x150] sm:$0xff] }
  0x53   :  { %406 = vmatmul.f32.vlgmr.msrb.gmra.mxu3 %v962_v5  ;;  %381 = vmatpush.msrb.mxu1 %v74_v3  ;;  %v540_v42 = vld [vmem:[#allocation4 + $0xd8] sm:$0xff]  ;;  %v1004_v3 = vld [vmem:[%s1118_s2] sm:$0xf] }
  0x54   :  { %443 = vmatpush.msra.mxu0 %v103_v4  ;;  %468 = vmatpush.msrb.mxu2 %v159_v6  ;;  %v516_v45 = vld [vmem:[#allocation4 + $0x18] sm:$0xff]  ;;  %v214_v6 = vperm.slane %v1004_v3, 0 }
  0x55   :  { %582 = vmatpush.msra.mxu3 %v528_v7  ;;  %382 = vmatpush.msrb.mxu1 %v70_v8  ;;  %v536_v50 = vld [vmem:[#allocation4 + $0xb8] sm:$0xff]  ;;  %v554_v7 = vld [vmem:[#allocation4 + $0x148] sm:$0xff]  ;;  %v553_v8 = vld [vmem:[#allocation4 + $0x140] sm:$0xff] }
  0x56   :  { %444 = vmatpush.msra.mxu0 %v99_v9  ;;  %469 = vmatpush.msrb.mxu2 %v155_v10  ;;  %v560_v54 = vld [vmem:[#allocation4 + $0x178] sm:$0xff] }
  0x57   :  { %383 = vmatmul.f32.vlgmr.msrb.gmra.mxu1 %v949_v0  ;;  %583 = vmatpush.msra.mxu3 %v527_v14  ;;  %v532_v56 = vld [vmem:[#allocation4 + $0x98] sm:$0xff] }
  0x58   :  { %445 = vmatpush.msra.mxu0 %v95_v11  ;;  %494 = vmatpush.msra.mxu1 %v211_v12  ;;  %v556_v63 = vld [vmem:[#allocation4 + $0x158] sm:$0xff]  ;;  %v575_v11 = vld [vmem:[#allocation4 + $0x1f0] sm:$0xff] }
  0x59   :  { %470 = vmatpush.msrb.mxu2 %v151_v13  ;;  %584 = vmatpush.msra.mxu3 %v526_v22  ;;  %v576_v9 = vld [vmem:[#allocation4 + $0x1f8] sm:$0xff]  ;;  %v574_v13 = vld [vmem:[#allocation4 + $0x1e8] sm:$0xff] }
  0x5a   :  { %815 = vmatmul.msk.f32.gmra.mxu2 %vm222_vm0, %v954_v1  ;;  %446 = vmatpush.msra.mxu0 %v91_v15  ;;  %v552_v10 = vld [vmem:[#allocation4 + $0x138] sm:$0xff]  ;;  %v551_v15 = vld [vmem:[#allocation4 + $0x130] sm:$0xff] }
  0x5b   :  { %471 = vmatpush.msrb.mxu2 %v147_v16  ;;  %409 = vmatmul.f32.gmra.mxu3 %v974_v21  ;;  %v573_v16 = vld [vmem:[#allocation4 + $0x1e0] sm:$0xff] }
  0x5c   :  { %447 = vmatpush.msra.mxu0 %v87_v18  ;;  %495 = vmatpush.msra.mxu1 %v207_v19  ;;  %v550_v19 = vld [vmem:[#allocation4 + $0x128] sm:$0xff] }
  0x5d   :  { %472 = vmatpush.msrb.mxu2 %v143_v20  ;;  %585 = vmatpush.msra.mxu3 %v525_v29 }
  0x5e   :  { %448 = vmatpush.msra.mxu0 %v83_v23  ;;  %496 = vmatpush.msra.mxu1 %v203_v24  ;;  %v549_v24 = vld [vmem:[#allocation4 + $0x120] sm:$0xff] }
  0x5f   :  { %473 = vmatpush.msrb.mxu2 %v139_v25  ;;  %386 = vmatmul.f32.gmra.mxu1 %v969_v17  ;;  %v572_v25 = vld [vmem:[#allocation4 + $0x1d8] sm:$0xff] }
  0x60   :  { %449 = vmatpush.msra.mxu0 %v79_v26  ;;  %497 = vmatpush.msra.mxu1 %v199_v27  ;;  %v215_v27 = vperm.slane %v1004_v3, 1 }
  0x61   :  { %474 = vmatpush.msrb.mxu2 %v135_v28  ;;  %586 = vmatpush.msra.mxu3 %v524_v31  ;;  %v571_v31 = vld [vmem:[#allocation4 + $0x1d0] sm:$0xff] }
  0x62   :  { %475 = vmatmul.f32.vlgmr.msrb.gmra.mxu2 %v962_v5  ;;  %450 = vmatpush.msra.mxu0 %v75_v30  ;;  %v541_v5 = vld [vmem:[#allocation4 + $0xe0] sm:$0xff]  ;;  %v548_v30 = vld [vmem:[#allocation4 + $0x118] sm:$0xff] }
  0x63   :  { %587 = vmatpush.msra.mxu3 %v523_v33  ;;  %628 = vmatpush.msrb.mxu1 %v560_v54 }
  0x64   :  { %451 = vmatpush.msra.mxu0 %v71_v32  ;;  %651 = vmatpush.msra.mxu2 %v576_v9 }
  0x65   :  { %452 = vmatmul.f32.vlgmr.msra.gmra.mxu0 %v949_v0  ;;  %588 = vmatpush.msra.mxu3 %v522_v35  ;;  %v570_v35 = vld [vmem:[#allocation4 + $0x1c8] sm:$0xff] }
  0x66   :  { %605 = vmatpush.msrb.mxu0 %v544_v34  ;;  %629 = vmatpush.msrb.mxu1 %v559_v57  ;;  %v547_v34 = vld [vmem:[#allocation4 + $0x110] sm:$0xff] }
  0x67   :  { %816 = vmatmul.msk.f32.vlgmr.msra.gmra.mxu1 %vm222_vm0, %v942_v47  ;;  %589 = vmatpush.msra.mxu3 %v521_v37 }
  0x68   :  { %606 = vmatpush.msrb.mxu0 %v543_v36  ;;  %630 = vmatpush.msrb.mxu1 %v558_v59  ;;  %v562_v59 = vld [vmem:[#allocation4 + $0x188] sm:$0xff] }
  0x69   :  { %590 = vmatpush.msra.mxu3 %v520_v39  ;;  %652 = vmatpush.msra.mxu2 %v575_v11  ;;  %v569_v39 = vld [vmem:[#allocation4 + $0x1c0] sm:$0xff] }
  0x6a   :  { %478 = vmatmul.f32.gmra.mxu2 %v974_v21  ;;  %607 = vmatpush.msrb.mxu0 %v542_v38  ;;  %v538_v21 = vld [vmem:[#allocation4 + $0xc8] sm:$0xff] }
  0x6b   :  { %591 = vmatpush.msra.mxu3 %v519_v40  ;;  %631 = vmatpush.msrb.mxu1 %v557_v61  ;;  %v546_v38 = vld [vmem:[#allocation4 + $0x108] sm:$0xff]  ;;  %v561_v61 = vld [vmem:[#allocation4 + $0x180] sm:$0xff] }
  0x6c   :  { %608 = vmatpush.msrb.mxu0 %v541_v5  ;;  %653 = vmatpush.msra.mxu2 %v574_v13 }
  0x6d   :  { %455 = vmatmul.f32.gmra.mxu0 %v969_v17  ;;  %592 = vmatpush.msra.mxu3 %v518_v41  ;;  %v545_v41 = vld [vmem:[#allocation4 + $0x100] sm:$0xff] }
  0x6e   :  { %609 = vmatpush.msrb.mxu0 %v540_v42  ;;  %632 = vmatpush.msrb.mxu1 %v556_v63  ;;  %v568_v42 = vld [vmem:[#allocation4 + $0x1b8] sm:$0xff] }
  0x6f   :  { %817 = vmatmul.msk.f32.gmra.mxu1 %vm222_vm0, %v954_v1  ;;  %593 = vmatpush.msra.mxu3 %v517_v43 }
  0x70   :  { %610 = vmatpush.msrb.mxu0 %v539_v44  ;;  %633 = vmatpush.msrb.mxu1 %v555_v2 }
  0x71   :  { %594 = vmatpush.msra.mxu3 %v516_v45  ;;  %654 = vmatpush.msra.mxu2 %v573_v16  ;;  %v567_v45 = vld [vmem:[#allocation4 + $0x1b0] sm:$0xff] }
  0x72   :  { %611 = vmatpush.msrb.mxu0 %v538_v21  ;;  %634 = vmatpush.msrb.mxu1 %v554_v7 }
  0x73   :  { %595 = vmatpush.msra.mxu3 %v515_v46  ;;  %655 = vmatpush.msra.mxu2 %v572_v25  ;;  %v566_v46 = vld [vmem:[#allocation4 + $0x1a8] sm:$0xff] }
  0x74   :  { %612 = vmatpush.msrb.mxu0 %v537_v48  ;;  %635 = vmatpush.msrb.mxu1 %v553_v8 }
  0x75   :  { %596 = vmatpush.msra.mxu3 %v514_v49  ;;  %656 = vmatpush.msra.mxu2 %v571_v31 }
  0x76   :  { %613 = vmatpush.msrb.mxu0 %v536_v50  ;;  %636 = vmatpush.msrb.mxu1 %v552_v10 }
  0x77   :  { %597 = vmatpush.msra.mxu3 %v513_v51  ;;  %657 = vmatpush.msra.mxu2 %v570_v35  ;;  %v565_v51 = vld [vmem:[#allocation4 + $0x1a0] sm:$0xff] }
  0x78   :  { %614 = vmatpush.msrb.mxu0 %v535_v52  ;;  %637 = vmatpush.msrb.mxu1 %v551_v15 }
  0x79   :  { %658 = vmatpush.msra.mxu2 %v569_v39  ;;  %v691_v39 = vld [vmem:[%s1121_s5 + $0x58] sm:$0xff] }
  0x7a   :  { %615 = vmatpush.msrb.mxu0 %v534_v53  ;;  %638 = vmatpush.msrb.mxu1 %v550_v19  ;;  %v564_v53 = vld [vmem:[#allocation4 + $0x198] sm:$0xff] }
  0x7b   :  { %659 = vmatpush.msra.mxu2 %v568_v42  ;;  %v687_v42 = vld [vmem:[%s1121_s5 + $0x38] sm:$0xff] }
  0x7c   :  { %616 = vmatpush.msrb.mxu0 %v533_v55  ;;  %639 = vmatpush.msrb.mxu1 %v549_v24 }
  0x7d   :  { %660 = vmatpush.msra.mxu2 %v567_v45  ;;  %v678_v45 = vld [vmem:[%s1120_s4 + $0x10] sm:$0xff] }
  0x7e   :  { %617 = vmatpush.msrb.mxu0 %v532_v56  ;;  %640 = vmatpush.msrb.mxu1 %v548_v30  ;;  %v563_v56 = vld [vmem:[#allocation4 + $0x190] sm:$0xff] }
  0x7f   :  { %661 = vmatpush.msra.mxu2 %v566_v46  ;;  %v684_v46 = vld [vmem:[%s1121_s5 + $0x20] sm:$0xff] }
  0x80   :  { %618 = vmatpush.msrb.mxu0 %v531_v58  ;;  %641 = vmatpush.msrb.mxu1 %v547_v34 }
  0x81   :  { %662 = vmatpush.msra.mxu2 %v565_v51  ;;  %v677_v51 = vld [vmem:[%s1120_s4 + $0x8] sm:$0xff] }
  0x82   :  { %619 = vmatpush.msrb.mxu0 %v530_v60  ;;  %642 = vmatpush.msrb.mxu1 %v546_v38  ;;  %v692_v38 = vld [vmem:[%s1121_s5 + $0x60] sm:$0xff] }
  0x83   :  { %663 = vmatpush.msra.mxu2 %v564_v53  ;;  %v676_v53 = vld [vmem:[%s1120_s4] sm:$0xff] }
  0x84   :  { %620 = vmatpush.msrb.mxu0 %v529_v62  ;;  %643 = vmatpush.msrb.mxu1 %v545_v41  ;;  %v216_v62 = vperm.slane %v1004_v3, 2  ;;  %v688_v41 = vld [vmem:[%s1121_s5 + $0x40] sm:$0xff] }
  0x85   :  { %664 = vmatpush.msra.mxu2 %v563_v56  ;;  %v752_v56 = vld [vmem:[%s1122_s6 + $0x28] sm:$0xff] }
  0x87   :  { %665 = vmatpush.msra.mxu2 %v562_v59 }
  0x89   :  { %666 = vmatpush.msra.mxu2 %v561_v61 }
  0x9b   :  { %v292_v4 = vpop.f32.mrf.mxu2 }
  0xad   :  { %v246_v12 = vpop.f32.mrf.mxu0 }
  0xae   :  { %v247_v14 = vadd.f32 %v246_v12, %v214_v6 }
  0xaf   :  { %v269_v18 = vpop.f32.mrf.mxu1 }
  0xb0   :  { %v270_v20 = vadd.f32 %v269_v18, %v247_v14  ;;  %v217_v18 = vperm.slane %v1004_v3, 3  ;;  %v695_v3 = vld [vmem:[%s1121_s5 + $0x78] sm:$0xff] }
  0xb1   :  { %v295_v23 = vpop.f32.mrf.mxu2  ;;  %696 = vmatpush.msrb.mxu3 %v695_v3 }
  0xb2   :  { %v293_v22 = vadd.f32 %v292_v4, %v270_v20  ;;  %v1012_v4 = vld [vmem:[%s1123_s7] sm:$0x1f] }
  0xb3   :  { %v578_v7 = vrot.slane %v1012_v4, 3 }
  0xb4   :  { %v505_v26 = vmax.f32 %v293_v22, 0.0 }
  0xb5   :  { %v249_v28 = vpop.f32.mrf.mxu0  ;;  %v315_v29 = vpop.f32.mrf.mxu3  ;;  %822 = vpush %v578_v7 }
  0xb6   :  { %v250_v32 = vadd.f32 %v249_v28, %v214_v6  ;;  %598 = vmatmul.f32.vlgmr.msra.gmra.mxu3 %v505_v26  ;;  %v316_v37 = vadd.f32 %v315_v29, %v215_v27 }
  0xb7   :  { %v272_v33 = vpop.f32.mrf.mxu1 }
  0xb8   :  { %v273_v36 = vadd.f32 %v272_v33, %v250_v32 }
  0xba   :  { %v296_v5 = vadd.f32 %v295_v23, %v273_v36  ;;  %v694_v36 = vld [vmem:[%s1121_s5 + $0x70] sm:$0xff] }
  0xbb   :  { %v338_v40 = vpop.f32.mrf.mxu2  ;;  %697 = vmatpush.msrb.mxu3 %v694_v36 }
  0xbc   :  { %v339_v43 = vadd.f32 %v338_v40, %v316_v37  ;;  %v509_v44 = vmax.f32 %v296_v5, 0.0  ;;  %v693_v37 = vld [vmem:[%s1121_s5 + $0x68] sm:$0xff]  ;;  %v690_v5 = vld [vmem:[%s1121_s5 + $0x50] sm:$0xff] }
  0xbd   :  { %698 = vmatpush.msrb.mxu3 %v693_v37  ;;  %v689_v40 = vld [vmem:[%s1121_s5 + $0x48] sm:$0xff] }
  0xbe   :  { %v361_v21 = vpop.f32.mrf.mxu0  ;;  %601 = vmatmul.f32.gmra.mxu3 %v509_v44  ;;  %v679_v44 = vld [vmem:[%s1120_s4 + $0x18] sm:$0xff] }
  0xbf   :  { %v362_v48 = vadd.f32 %v361_v21, %v339_v43  ;;  %699 = vmatpush.msrb.mxu3 %v692_v38  ;;  %v686_v43 = vld [vmem:[%s1121_s5 + $0x30] sm:$0xff]  ;;  %731 = vmatpush.msra.mxu0 %v679_v44  ;;  %v685_v21 = vld [vmem:[%s1121_s5 + $0x28] sm:$0xff] }
  0xc1   :  { %v506_v49 = vmax.f32 %v362_v48, 0.0  ;;  %700 = vmatpush.msrb.mxu3 %v691_v39  ;;  %732 = vmatpush.msra.mxu0 %v678_v45  ;;  %v683_v48 = vld [vmem:[%s1121_s5 + $0x18] sm:$0xff] }
  0xc2   :  { %v318_v50 = vpop.f32.mrf.mxu3 }
  0xc3   :  { %v319_v52 = vadd.f32 %v318_v50, %v215_v27  ;;  %621 = vmatmul.f32.vlgmr.msrb.gmra.mxu0 %v506_v49  ;;  %701 = vmatpush.msrb.mxu3 %v690_v5  ;;  %v682_v49 = vld [vmem:[%s1121_s5 + $0x10] sm:$0xff]  ;;  %v681_v50 = vld [vmem:[%s1121_s5 + $0x8] sm:$0xff] }
  0xc4   :  { %733 = vmatpush.msra.mxu0 %v677_v51 }
  0xc5   :  { %v341_v54 = vpop.f32.mrf.mxu2  ;;  %702 = vmatpush.msrb.mxu3 %v689_v40 }
  0xc6   :  { %v342_v55 = vadd.f32 %v341_v54, %v319_v52  ;;  %v680_v52 = vld [vmem:[%s1121_s5] sm:$0xff]  ;;  %734 = vmatpush.msra.mxu0 %v676_v53  ;;  %v754_v54 = vld [vmem:[%s1122_s6 + $0x38] sm:$0xff] }
  0xc7   :  { %v364_v57 = vpop.f32.mrf.mxu0  ;;  %703 = vmatpush.msrb.mxu3 %v688_v41  ;;  %771 = vmatpush.msra.mxu1 %v754_v54  ;;  %v798_v41 = vperm.slane %v1012_v4, 4 }
  0xc8   :  { %v365_v58 = vadd.f32 %v364_v57, %v342_v55  ;;  %v753_v55 = vld [vmem:[%s1122_s6 + $0x30] sm:$0xff]  ;;  %v750_v57 = vld [vmem:[%s1122_s6 + $0x18] sm:$0xff] }
  0xc9   :  { %704 = vmatpush.msrb.mxu3 %v687_v42  ;;  %772 = vmatpush.msra.mxu1 %v753_v55 }
  0xca   :  { %v510_v60 = vmax.f32 %v365_v58, 0.0 }
  0xcb   :  { %705 = vmatpush.msrb.mxu3 %v686_v43  ;;  %773 = vmatpush.msra.mxu1 %v752_v56 }
  0xcc   :  { %624 = vmatmul.f32.gmra.mxu0 %v510_v60 }
  0xcd   :  { %706 = vmatpush.msrb.mxu3 %v685_v21 }
  0xcf   :  { %707 = vmatpush.msrb.mxu3 %v684_v46 }
  0xd1   :  { %708 = vmatpush.msrb.mxu3 %v683_v48 }
  0xd3   :  { %709 = vmatpush.msrb.mxu3 %v682_v49 }
  0xd4   :  { %v384_v63 = vpop.f32.mrf.mxu1  ;;  %v430_v2 = vpop.f32.mrf.mxu2  ;;  %818 = vmatmul.msk.f32.vlgmr.msra.gmra.mxu0 %vm222_vm0, %v942_v47  ;;  %v751_v47 = vld [vmem:[%s1122_s6 + $0x20] sm:$0xff] }
  0xd5   :  { %v385_v6 = vadd.f32 %v384_v63, %v216_v62  ;;  %710 = vmatpush.msrb.mxu3 %v681_v50  ;;  %774 = vmatpush.msra.mxu1 %v751_v47 }
  0xd6   :  { %v407_v8 = vpop.f32.mrf.mxu3 }
  0xd7   :  { %v408_v9 = vadd.f32 %v407_v8, %v385_v6  ;;  %711 = vmatpush.msrb.mxu3 %v680_v52  ;;  %775 = vmatpush.msra.mxu1 %v750_v57 }
  0xd9   :  { %v431_v10 = vadd.f32 %v430_v2, %v408_v9 }
  0xdb   :  { %v507_v11 = vmax.f32 %v431_v10, 0.0 }
  0xdc   :  { %v387_v12 = vpop.f32.mrf.mxu1  ;;  %819 = vmatmul.msk.f32.gmra.mxu0 %vm222_vm0, %v954_v1 }
  0xdd   :  { %v388_v13 = vadd.f32 %v387_v12, %v216_v62  ;;  %v433_v14 = vpop.f32.mrf.mxu2  ;;  %644 = vmatmul.f32.vlgmr.msrb.gmra.mxu1 %v507_v11 }
  0xde   :  { %v410_v15 = vpop.f32.mrf.mxu3 }
  0xdf   :  { %v411_v16 = vadd.f32 %v410_v15, %v388_v13 }
  0xe1   :  { %v434_v19 = vadd.f32 %v433_v14, %v411_v16 }
  0xe2   :  { %v453_v20 = vpop.f32.mrf.mxu0 }
  0xe3   :  { %v454_v22 = vadd.f32 %v453_v20, %v217_v18  ;;  %v511_v23 = vmax.f32 %v434_v19, 0.0  ;;  %v748_v19 = vld [vmem:[%s1122_s6 + $0x8] sm:$0xff] }
  0xe4   :  { %v499_v24 = vpop.f32.mrf.mxu1 }
  0xe5   :  { %v476_v25 = vpop.f32.mrf.mxu2  ;;  %647 = vmatmul.f32.gmra.mxu1 %v511_v23 }
  0xe6   :  { %v477_v26 = vadd.f32 %v476_v25, %v454_v22  ;;  %s823_s27 = spop %822  ;;  %v742_v22 = vperm.slane %v1012_v4, 0 }
  0xe7   :  { %v580_v59 = vstv %s823_s27 }
  0xe8   :  { %v500_v27 = vadd.f32 %v499_v24, %v477_v26 }
  0xea   :  { %v508_v28 = vmax.f32 %v500_v27, 0.0  ;;  %v456_v29 = vpop.f32.mrf.mxu0 }
  0xeb   :  { %v457_v30 = vadd.f32 %v456_v29, %v217_v18  ;;  %v749_v18 = vld [vmem:[%s1122_s6 + $0x10] sm:$0xff] }
  0xec   :  { %667 = vmatmul.f32.vlgmr.msra.gmra.mxu2 %v508_v28  ;;  %v502_v32 = vpop.f32.mrf.mxu1  ;;  %776 = vmatpush.msra.mxu1 %v749_v18 }
  0xed   :  { %v479_v31 = vpop.f32.mrf.mxu2 }
  0xee   :  { %v480_v33 = vadd.f32 %v479_v31, %v457_v30  ;;  %777 = vmatpush.msra.mxu1 %v748_v19  ;;  %v755_v31 = vperm.slane %v1012_v4, 1 }
  0xf0   :  { %v503_v34 = vadd.f32 %v502_v32, %v480_v33 }
  0xf2   :  { %v512_v35 = vmax.f32 %v503_v34, 0.0  ;;  %v788_v34 = vperm.slane %v1012_v4, 2 }
  0xf4   :  { %670 = vmatmul.f32.gmra.mxu2 %v512_v35 }
 0x139   :  { %v599_v58 = vpop.f32.mrf.mxu3 }
 0x13a   :  { %v600_v61 = vadd.f32 %v599_v58, %v580_v59 }
 0x140   :  { %v622_v1 = vpop.f32.mrf.mxu0 }
 0x141   :  { %v623_v62 = vadd.f32 %v622_v1, %v600_v61  ;;  %v602_v2 = vpop.f32.mrf.mxu3 }
 0x142   :  { %v603_v9 = vadd.f32 %v602_v2, %v580_v59 }
 0x149   :  { %v625_v8 = vpop.f32.mrf.mxu0 }
 0x14a   :  { %v626_v12 = vadd.f32 %v625_v8, %v603_v9 }
 0x151   :  { %v736_v20 = vpop.f32.mrf.mxu0 }
 0x159   :  { %v739_v26 = vpop.f32.mrf.mxu0 }
 0x15a   :  { %v645_v60 = vpop.f32.mrf.mxu1 }
 0x15b   :  { %v646_v63 = vadd.f32 %v645_v60, %v623_v62 }
 0x162   :  { %v648_v11 = vpop.f32.mrf.mxu1 }
 0x163   :  { %v649_v13 = vadd.f32 %v648_v11, %v626_v12 }
 0x16f   :  { %v668_v6 = vpop.f32.mrf.mxu2 }
 0x170   :  { %v669_v7 = vadd.f32 %v668_v6, %v646_v63 }
 0x172   :  { %v674_v10 = vmul.f32 %v669_v7, %v949_v0  ;;  %v747_v0 = vld [vmem:[%s1122_s6] sm:$0xff] }
 0x173   :  { %778 = vmatpush.msra.mxu1 %v747_v0 }
 0x174   :  { %712 = vmatmul.f32.vlgmr.msrb.gmra.mxu3 %v674_v10 }
 0x177   :  { %v671_v14 = vpop.f32.mrf.mxu2 }
 0x178   :  { %v672_v15 = vadd.f32 %v671_v14, %v649_v13 }
 0x17a   :  { %v675_v16 = vmul.f32 %v672_v15, %v969_v17 }
 0x17c   :  { %715 = vmatmul.f32.gmra.mxu3 %v675_v16 }
 0x1f7   :  { %v713_v17 = vpop.f32.mrf.mxu3 }
 0x1f8   :  { %v737_v23 = vadd.f32 %v736_v20, %v713_v17 }
 0x1fa   :  { %v743_v24 = vadd.f32 %v742_v22, %v737_v23 }
 0x1fc   :  { %v745_v25 = vmax.f32 %v743_v24, 0.0 }
 0x1fe   :  { %820 = vmatmul.msk.f32.vlgmr.msra.gmra.mxu1 %vm756_vm1, %v745_v25 }
 0x1ff   :  { %v716_v27 = vpop.f32.mrf.mxu3 }
 0x200   :  { %v740_v28 = vadd.f32 %v739_v26, %v716_v27 }
 0x202   :  { %v744_v29 = vadd.f32 %v742_v22, %v740_v28 }
 0x204   :  { %v746_v30 = vmax.f32 %v744_v29, 0.0 }
 0x206   :  { %821 = vmatmul.msk.f32.gmra.mxu1 %vm756_vm1, %v746_v30 }
 0x27b   :  { %v780_v32 = vpop.f32.mrf.mxu1 }
 0x27c   :  { %v781_v33 = vadd.f32 %v780_v32, %v755_v31 }
 0x27e   :  { %v786_v35 = vmax.f32 %v781_v33, 0.0 }
 0x280   :  { %v789_v3 = vmul.f32 %v788_v34, %v786_v35 }
 0x282   :  { %v792_v36 = vsel %vm791_vm2, %v789_v3, 0.0 }
 0x283   :  { %793 = vadd.xlane.f32.xlu0 %v792_v36  ;;  %v783_v37 = vpop.f32.mrf.mxu1 }
 0x284   :  { %v784_v38 = vadd.f32 %v783_v37, %v755_v31 }
 0x286   :  { %v787_v39 = vmax.f32 %v784_v38, 0.0 }
 0x288   :  { %v790_v5 = vmul.f32 %v788_v34, %v787_v39 }
 0x28a   :  { %v795_v40 = vsel %vm791_vm2, %v790_v5, 0.0 }
 0x28b   :  { %796 = vadd.xlane.f32.xlu0 %v795_v40 }
 0x2f6   :  { %v794_v42 = vpop.xlane.xlu0 %793 }
 0x2f7   :  { %v799_v43 = vadd.f32 %v798_v41, %v794_v42 }
 0x2f9   :  { %802 = vst.msk [vmem:[%s1124_s8] sm:$0xff] %vm801_vm3, %v799_v43 }
 0x2fe   :  { %v797_v44 = vpop.xlane.xlu0 %796 }
 0x2ff   :  { %v800_v45 = vadd.f32 %v798_v41, %v797_v44 }
 0x301   :  { %803 = vst.msk [vmem:[%s1124_s8 + $0x8] sm:$0xff] %vm801_vm3, %v800_v45 }
 0x302   :  { %808 = vsyncpa [#allocation3], 1 }
 0x303   :  { %809 = vsyncpa [#allocation5], 1 }

</bundles_post_ra>
